<compile_context>
chip_gen: v7x
topology: tpu7x:2x2x1
jax: 0.10.0
libtpu: 0.0.40
codegen_flags: <defaults>
</compile_context>

<pallas_src>
import functools

import jax
import jax.numpy as jnp
import numpy as np
from jax.experimental import pallas as pl
from jax.experimental.pallas import tpu as pltpu

LANE = 128    # TPU lane width; pad every gate / vocab block to a full lane tile.
SUBLANE = 8   # f32 sublane height; pad batch so stores are full (8,128) tiles.


def _round_up(x, m):
    return ((x + m - 1) // m) * m


def _decoder_kernel(ids_ref, embg_ref, whh_ref, h_ref, c_ref,
                    wout_ref, bout_ref, pred_ref, hout_ref, cout_ref,
                    *, hp, vp):
    """One fused decode step. Operands are zero-padded to lane-aligned widths
    (hp = padded hidden, vp = padded vocab). The padding stays identically zero
    through the recurrence (sigmoid(0) * 0 terms), so no masking is needed.
    The LSTM bias is pre-folded into embg (one-hot rows sum to 1)."""
    ids = ids_ref[...]                                            # (B, 1) int32
    b = ids.shape[0]

    # Embedding gather as a one-hot MXU matmul against the pre-fused
    # (embedding @ W_ih^T + b_ih + b_hh) table -> directly the input+bias
    # contribution to the gates.
    onehot = (jax.lax.broadcasted_iota(jnp.int32, (b, vp), 1) == ids
              ).astype(jnp.float32)                               # (B, vp)

    gates = (jnp.dot(onehot, embg_ref[...], preferred_element_type=jnp.float32)
             + jnp.dot(h_ref[...], whh_ref[...],
                       preferred_element_type=jnp.float32))       # (B, 4*hp)

    # Gate order matches PyTorch nn.LSTM: [i, f, g, o]; slices are 128-lane aligned.
    i_g = jax.nn.sigmoid(gates[:, 0 * hp:1 * hp])
    f_g = jax.nn.sigmoid(gates[:, 1 * hp:2 * hp])
    g_g = jnp.tanh(gates[:, 2 * hp:3 * hp])
    o_g = jax.nn.sigmoid(gates[:, 3 * hp:4 * hp])

    c_new = f_g * c_ref[...] + i_g * g_g
    h_new = o_g * jnp.tanh(c_new)

    cout_ref[...] = c_new
    hout_ref[...] = h_new
    # Output projection (hidden -> vocab); lane-dense (B, vp) store.
    pred_ref[...] = (jnp.dot(h_new, wout_ref[...],
                             preferred_element_type=jnp.float32)
                     + bout_ref[...])


def _decoder_step(ids2, emb_gates, whh, h_p, c_p, wout, bout):
    b, hp = h_p.shape
    vp = wout.shape[1]
    vmem = pl.BlockSpec(memory_space=pltpu.MemorySpace.VMEM)

    flops = 2 * b * (vp * 4 * hp + hp * 4 * hp + hp * vp)
    bytes_accessed = (4 * sum(int(x.size) for x in
                              (ids2, emb_gates, whh, h_p, c_p, wout, bout))
                      + 4 * (b * vp + 2 * b * hp))

    return pl.pallas_call(
        functools.partial(_decoder_kernel, hp=hp, vp=vp),
        out_shape=(jax.ShapeDtypeStruct((b, vp), jnp.float32),
                   jax.ShapeDtypeStruct((b, hp), jnp.float32),
                   jax.ShapeDtypeStruct((b, hp), jnp.float32)),
        in_specs=[vmem] * 7,
        out_specs=(vmem, vmem, vmem),
        cost_estimate=pl.CostEstimate(flops=flops,
                                      transcendentals=5 * b * hp,
                                      bytes_accessed=bytes_accessed),
    )(ids2, emb_gates, whh, h_p, c_p, wout, bout)


def prepare_params(params, *, hp, vp):
    """One-time parameter prep (hoisted out of the per-token path):
    transpose to row-major matmul layout, fold b_ih + b_hh into the fused
    embedding/gate table ( x @ W_ih^T + b == onehot @ (emb @ W_ih^T + b) since
    one-hot rows sum to 1 ), and zero-pad every gate / vocab block to a full
    128-lane tile."""
    f32 = jnp.float32
    emb = params["embedding"].astype(f32)                 # (Vin, E)
    w_ih = params["w_ih"].astype(f32)                     # (4H, E)
    w_hh = params["w_hh"].astype(f32)                     # (4H, H)
    bias = (params["b_ih"] + params["b_hh"]).astype(f32)  # (4H,)
    w_out = params["w_out"].astype(f32)                   # (V, H)
    b_out = params["b_out"].astype(f32)                   # (V,)

    vin = emb.shape[0]
    h = w_hh.shape[1]
    v = w_out.shape[0]
    assert vin <= vp and v <= vp and h <= hp

    def pad_gate_cols(m):  # (K, 4H) -> (K, 4*hp): each [i,f,g,o] block padded H -> hp
        k = m.shape[0]
        out = jnp.zeros((k, 4, hp), f32).at[:, :, :h].set(m.reshape(k, 4, h))
        return out.reshape(k, 4 * hp)

    emb_gates = pad_gate_cols(emb @ w_ih.T + bias[None, :])              # (Vin, 4hp)
    emb_gates = jnp.zeros((vp, 4 * hp), f32).at[:vin].set(emb_gates)     # (vp, 4hp)
    whh = jnp.zeros((hp, 4 * hp), f32).at[:h].set(pad_gate_cols(w_hh.T))  # (hp, 4hp)
    wout = jnp.zeros((hp, vp), f32).at[:h, :v].set(w_out.T)              # (hp, vp)
    bout = jnp.zeros((1, vp), f32).at[0, :v].set(b_out)                  # (1, vp)

    return dict(emb_gates=emb_gates, whh=whh, wout=wout, bout=bout)


def make_decoder(params):
    """Returns a jitted forward(token_ids, h, c) -> (prediction, h_new, c_new)."""
    hidden = params["w_hh"].shape[1]
    vocab = params["w_out"].shape[0]
    hp = _round_up(hidden, LANE)
    vp = _round_up(max(vocab, params["embedding"].shape[0]), LANE)
    prep = prepare_params(params, hp=hp, vp=vp)

    @jax.jit
    def forward(token_ids, h, c):
        b = token_ids.shape[0]
        bp = _round_up(b, SUBLANE)
        ids2 = jnp.zeros((bp, 1), jnp.int32).at[:b, 0].set(token_ids.astype(jnp.int32))
        h_p = jnp.zeros((bp, hp), jnp.float32).at[:b, :hidden].set(h.astype(jnp.float32))
        c_p = jnp.zeros((bp, hp), jnp.float32).at[:b, :hidden].set(c.astype(jnp.float32))
        pred_p, h_new_p, c_new_p = _decoder_step(
            ids2, prep["emb_gates"], prep["whh"], h_p, c_p,
            prep["wout"], prep["bout"])
        return (pred_p[:b, :vocab],
                h_new_p[:b, :hidden],
                c_new_p[:b, :hidden])

    return forward


def _reference_forward(token_ids, h, c, params):
    """Pure-JAX reference matching PyTorch nn.LSTM / nn.Linear semantics."""
    x = params["embedding"][token_ids]
    gates = (x @ params["w_ih"].T + params["b_ih"]
             + h @ params["w_hh"].T + params["b_hh"])
    H = h.shape[-1]
    i = jax.nn.sigmoid(gates[:, 0 * H:1 * H])
    f = jax.nn.sigmoid(gates[:, 1 * H:2 * H])
    g = jnp.tanh(gates[:, 2 * H:3 * H])
    o = jax.nn.sigmoid(gates[:, 3 * H:4 * H])
    c_new = f * c + i * g
    h_new = o * jnp.tanh(c_new)
    pred = h_new @ params["w_out"].T + params["b_out"]
    return pred, h_new, c_new


if __name__ == "__main__":
    # Small, module-consistent shapes (num_layers=1; hidden.unsqueeze(0) implies 1 layer).
    vocab_size, embedding_dim, hidden_size, batch = 64, 32, 32, 8

    key = jax.random.PRNGKey(0)
    ks = jax.random.split(key, 10)
    k = 1.0 / np.sqrt(hidden_size)

    params = {
        "embedding": jax.random.normal(ks[0], (vocab_size, embedding_dim), jnp.float32),
        "w_ih": jax.random.uniform(ks[1], (4 * hidden_size, embedding_dim), jnp.float32, -k, k),
        "w_hh": jax.random.uniform(ks[2], (4 * hidden_size, hidden_size), jnp.float32, -k, k),
        "b_ih": jax.random.uniform(ks[3], (4 * hidden_size,), jnp.float32, -k, k),
        "b_hh": jax.random.uniform(ks[4], (4 * hidden_size,), jnp.float32, -k, k),
        "w_out": jax.random.uniform(ks[5], (vocab_size, hidden_size), jnp.float32, -k, k),
        "b_out": jax.random.uniform(ks[6], (vocab_size,), jnp.float32, -k, k),
    }

    token_ids = jax.random.randint(ks[7], (batch,), 0, vocab_size, jnp.int32)
    h0 = jax.random.normal(ks[8], (batch, hidden_size), jnp.float32)
    c0 = jax.random.normal(ks[9], (batch, hidden_size), jnp.float32)

    decoder = make_decoder(params)
    pred, h1, c1 = decoder(token_ids, h0, c0)
    jax.block_until_ready((pred, h1, c1))

    # Correctness check against the pure-JAX reference.
    pred_r, h1_r, c1_r = _reference_forward(token_ids, h0, c0, params)
    np.testing.assert_allclose(np.asarray(pred), np.asarray(pred_r), atol=1e-5, rtol=1e-5)
    np.testing.assert_allclose(np.asarray(h1), np.asarray(h1_r), atol=1e-5, rtol=1e-5)
    np.testing.assert_allclose(np.asarray(c1), np.asarray(c1_r), atol=1e-5, rtol=1e-5)

    print("KERNEL_OK")
</pallas_src>

<mosaic_0001>
module attributes {stable_mosaic.version = 11 : i64} {
  func.func @_decoder_kernel(%arg0: memref<8x1xi32, #tpu.memory_space<vmem>>, %arg1: memref<128x512xf32, #tpu.memory_space<vmem>>, %arg2: memref<128x512xf32, #tpu.memory_space<vmem>>, %arg3: memref<8x128xf32, #tpu.memory_space<vmem>>, %arg4: memref<8x128xf32, #tpu.memory_space<vmem>>, %arg5: memref<128x128xf32, #tpu.memory_space<vmem>>, %arg6: memref<1x128xf32, #tpu.memory_space<vmem>>, %arg7: memref<8x128xf32, #tpu.memory_space<vmem>>, %arg8: memref<8x128xf32, #tpu.memory_space<vmem>>, %arg9: memref<8x128xf32, #tpu.memory_space<vmem>>) attributes {dimension_semantics = [], scalar_prefetch = 0 : i64, scratch_operands = 0 : i64, tpu.core_type = #tpu.core_type<tc>} {
    %c0 = arith.constant 0 : index
    %c0_0 = arith.constant 0 : index
    %0 = vector.load %arg0[%c0, %c0_0] : memref<8x1xi32, #tpu.memory_space<vmem>>, vector<8x1xi32>
    %1 = tpu.iota {dimensions = array<i32: 1>} : vector<8x128xi32>
    %2 = vector.broadcast %0 : vector<8x1xi32> to vector<8x128xi32>
    %3 = arith.cmpi eq, %1, %2 : vector<8x128xi32>
    %4 = arith.extui %3 : vector<8x128xi1> to vector<8x128xi32>
    %5 = arith.sitofp %4 : vector<8x128xi32> to vector<8x128xf32>
    %c0_1 = arith.constant 0 : index
    %c0_2 = arith.constant 0 : index
    %6 = vector.load %arg1[%c0_1, %c0_2] : memref<128x512xf32, #tpu.memory_space<vmem>>, vector<128x512xf32>
    %cst = arith.constant dense<0.000000e+00> : vector<8x512xf32>
    %7 = tpu.matmul %5, %6, %cst {dimension_numbers = #tpu.dot_dimension_numbers<[1], [0], [0], [1], [0, 0, 1, 1], [], []>} : vector<8x128xf32>, vector<128x512xf32>, vector<8x512xf32> -> vector<8x512xf32>
    %c0_3 = arith.constant 0 : index
    %c0_4 = arith.constant 0 : index
    %8 = vector.load %arg3[%c0_3, %c0_4] : memref<8x128xf32, #tpu.memory_space<vmem>>, vector<8x128xf32>
    %c0_5 = arith.constant 0 : index
    %c0_6 = arith.constant 0 : index
    %9 = vector.load %arg2[%c0_5, %c0_6] : memref<128x512xf32, #tpu.memory_space<vmem>>, vector<128x512xf32>
    %cst_7 = arith.constant dense<0.000000e+00> : vector<8x512xf32>
    %10 = tpu.matmul %8, %9, %cst_7 {dimension_numbers = #tpu.dot_dimension_numbers<[1], [0], [0], [1], [0, 0, 1, 1], [], []>} : vector<8x128xf32>, vector<128x512xf32>, vector<8x512xf32> -> vector<8x512xf32>
    %11 = arith.addf %7, %10 : vector<8x512xf32>
    %12 = vector.extract_strided_slice %11 {offsets = [0, 0], sizes = [8, 128], strides = [1, 1]} : vector<8x512xf32> to vector<8x128xf32>
    %13 = arith.negf %12 : vector<8x128xf32>
    %14 = math.exp %13 : vector<8x128xf32>
    %cst_8 = arith.constant 1.000000e+00 : f32
    %15 = vector.broadcast %cst_8 : f32 to vector<8x128xf32>
    %16 = arith.addf %15, %14 : vector<8x128xf32>
    %17 = arith.divf %15, %16 : vector<8x128xf32>
    %18 = vector.extract_strided_slice %11 {offsets = [0, 128], sizes = [8, 128], strides = [1, 1]} : vector<8x512xf32> to vector<8x128xf32>
    %19 = arith.negf %18 : vector<8x128xf32>
    %20 = math.exp %19 : vector<8x128xf32>
    %cst_9 = arith.constant 1.000000e+00 : f32
    %21 = vector.broadcast %cst_9 : f32 to vector<8x128xf32>
    %22 = arith.addf %21, %20 : vector<8x128xf32>
    %23 = arith.divf %21, %22 : vector<8x128xf32>
    %24 = vector.extract_strided_slice %11 {offsets = [0, 256], sizes = [8, 128], strides = [1, 1]} : vector<8x512xf32> to vector<8x128xf32>
    %25 = math.tanh %24 : vector<8x128xf32>
    %26 = vector.extract_strided_slice %11 {offsets = [0, 384], sizes = [8, 128], strides = [1, 1]} : vector<8x512xf32> to vector<8x128xf32>
    %27 = arith.negf %26 : vector<8x128xf32>
    %28 = math.exp %27 : vector<8x128xf32>
    %cst_10 = arith.constant 1.000000e+00 : f32
    %29 = vector.broadcast %cst_10 : f32 to vector<8x128xf32>
    %30 = arith.addf %29, %28 : vector<8x128xf32>
    %31 = arith.divf %29, %30 : vector<8x128xf32>
    %c0_11 = arith.constant 0 : index
    %c0_12 = arith.constant 0 : index
    %32 = vector.load %arg4[%c0_11, %c0_12] : memref<8x128xf32, #tpu.memory_space<vmem>>, vector<8x128xf32>
    %33 = arith.mulf %23, %32 : vector<8x128xf32>
    %34 = arith.mulf %17, %25 : vector<8x128xf32>
    %35 = arith.addf %33, %34 : vector<8x128xf32>
    %36 = math.tanh %35 : vector<8x128xf32>
    %37 = arith.mulf %31, %36 : vector<8x128xf32>
    %c0_13 = arith.constant 0 : index
    %c0_14 = arith.constant 0 : index
    %38 = vector.load %arg9[%c0_13, %c0_14] : memref<8x128xf32, #tpu.memory_space<vmem>>, vector<8x128xf32>
    tpu.vector_store %arg9[%c0_13, %c0_14], %35 {strides = array<i32>} : memref<8x128xf32, #tpu.memory_space<vmem>>, vector<8x128xf32>,
    %c0_15 = arith.constant 0 : index
    %c0_16 = arith.constant 0 : index
    %39 = vector.load %arg8[%c0_15, %c0_16] : memref<8x128xf32, #tpu.memory_space<vmem>>, vector<8x128xf32>
    tpu.vector_store %arg8[%c0_15, %c0_16], %37 {strides = array<i32>} : memref<8x128xf32, #tpu.memory_space<vmem>>, vector<8x128xf32>,
    %c0_17 = arith.constant 0 : index
    %c0_18 = arith.constant 0 : index
    %40 = vector.load %arg5[%c0_17, %c0_18] : memref<128x128xf32, #tpu.memory_space<vmem>>, vector<128x128xf32>
    %cst_19 = arith.constant dense<0.000000e+00> : vector<8x128xf32>
    %41 = tpu.matmul %37, %40, %cst_19 {dimension_numbers = #tpu.dot_dimension_numbers<[1], [0], [0], [1], [0, 0, 1, 1], [], []>} : vector<8x128xf32>, vector<128x128xf32>, vector<8x128xf32> -> vector<8x128xf32>
    %c0_20 = arith.constant 0 : index
    %c0_21 = arith.constant 0 : index
    %42 = vector.load %arg6[%c0_20, %c0_21] : memref<1x128xf32, #tpu.memory_space<vmem>>, vector<1x128xf32>
    %43 = vector.broadcast %42 : vector<1x128xf32> to vector<8x128xf32>
    %44 = arith.addf %41, %43 : vector<8x128xf32>
    %c0_22 = arith.constant 0 : index
    %c0_23 = arith.constant 0 : index
    %45 = vector.load %arg7[%c0_22, %c0_23] : memref<8x128xf32, #tpu.memory_space<vmem>>, vector<8x128xf32>
    tpu.vector_store %arg7[%c0_22, %c0_23], %44 {strides = array<i32>} : memref<8x128xf32, #tpu.memory_space<vmem>>, vector<8x128xf32>,
    return
  }
}

</mosaic_0001>

<bundles_post_ra>
// kernel: forward.1
= control target key start
LH: loop header
LB: loop body
LE: loop exit
PB: predicated region body
PF: predicated region fallthrough
CT: control target
= control target key end

     0   :  { %15 = vsyncpa [#allocation3], 0  ;;  %s1206_s0 = inlined_call_operand.vmem [shape: s32[8,1], index: 0, kind: input, shape index: {}]   ;;  %s1207_s1 = inlined_call_operand.hbm [shape: f32[128,512], index: 1, kind: input, shape index: {}]   ;;  %s1208_s2 = inlined_call_operand.hbm [shape: f32[128,512], index: 2, kind: input, shape index: {}]   ;;  %s1209_s3 = inlined_call_operand.vmem [shape: f32[8,128], index: 3, kind: input, shape index: {}]   ;;  %s1210_s4 = inlined_call_operand.vmem [shape: f32[8,128], index: 4, kind: input, shape index: {}]   ;;  %s1211_s5 = inlined_call_operand.hbm [shape: f32[128,128], index: 5, kind: input, shape index: {}]   ;;  %s1212_s6 = inlined_call_operand.vmem [shape: f32[1,128], index: 6, kind: input, shape index: {}]   ;;  %s1213_s7 = inlined_call_operand.hbm [shape: f32[8,128], index: 7, kind: output, shape index: {0}]   ;;  %s1214_s8 = inlined_call_operand.hbm [shape: f32[8,128], index: 8, kind: output, shape index: {1}]   ;;  %s1215_s9 = inlined_call_operand.hbm [shape: f32[8,128], index: 9, kind: output, shape index: {2}]  }
   0x1   :  { %16 = vsyncpa [#allocation6], 0 }
   0x2   :  { %17 = vsyncpa [#allocation4], 0 }
   0x3   :  { %18 = vsyncpa [#allocation10], 0  ;;  %s1045_s30 = smov [#allocation5]   ;;  %s1046_s11 = smov [#allocation2]  }
   0x4   :  { %s38_s10 = sshll.u32 %s1045_s30, 4  ;;  %s26_s12 = sshll.u32 %s1046_s11, 4  ;;  %s39_s10 = int_to_ptr.vmem [resolvable:$true] %s38_s10  ;;  %s1110_s12 = int_to_ptr.vmem [resolvable:$true] %s26_s12 }
   0x5   :  { %s905_s15 = scalar_lea.hbm %s1208_s2, 8192 }
   0x6   :  { %p906_p0 = scmp.ne.s32.totalorder %s1208_s2, %s905_s15  ;;  %p909_p1 = scmp.lt.u32.totalorder %s905_s15, %s1208_s2 }
   0x8   :  { %p911_p2 = pnand %p909_p1, %p906_p0 }
   0xa   :  { %914 = shalt.err (!%p911_p2)
}
   0xb   :  { %s915_s20 = scalar_lea.vmem %s39_s10, 8192  ;;  %p920_p4 = scmp.lt.s32.totalorder %s39_s10, %s39_s10 }
   0xc   :  { %p916_p3 = scmp.ne.s32.totalorder %s39_s10, %s915_s20  ;;  %p921_p5 = scmp.lt.s32.totalorder %s915_s20, %s915_s20 }
   0xe   :  { %p922_p6 = por %p921_p5, %p920_p4 }
  0x10   :  { %p923_p7 = pnand %p922_p6, %p916_p3 }
  0x12   :  { %926 = shalt.err (!%p923_p7)
}
  0x13   :  { %s1047_s21 = smov 512   ;;  %s1048_s22 = smov 32  }
  0x14   :  { %44 = dma.hbm_to_vmem [thread:$0]  %s1208_s2, 8192, %s39_s10, [#allocation6], %s1047_s21, %s1047_s21, %s1048_s22  }
  0x15   :  { %s927_s27 = scalar_lea.hbm %s1207_s1, 8192 }
  0x16   :  { %p928_p8 = scmp.ne.s32.totalorder %s1207_s1, %s927_s27  ;;  %p931_p9 = scmp.lt.u32.totalorder %s927_s27, %s1207_s1 }
  0x18   :  { %p933_p10 = pnand %p931_p9, %p928_p8 }
  0x1a   :  { %936 = shalt.err (!%p933_p10)
}
  0x1b   :  { %s937_s13 = scalar_lea.vmem %s1110_s12, 8192  ;;  %p942_p12 = scmp.lt.s32.totalorder %s1110_s12, %s1110_s12 }
  0x1c   :  { %p938_p11 = scmp.ne.s32.totalorder %s1110_s12, %s937_s13  ;;  %p943_p13 = scmp.lt.s32.totalorder %s937_s13, %s937_s13 }
  0x1e   :  { %p944_p0 = por %p943_p13, %p942_p12 }
  0x20   :  { %p945_p1 = pnand %p944_p0, %p938_p11 }
  0x22   :  { %948 = shalt.err (!%p945_p1)
}
  0x23   :  { %32 = dma.hbm_to_vmem [thread:$0]  %s1207_s1, 8192, %s1110_s12, [#allocation3], %s1047_s21, %s1047_s21, %s1048_s22  }
  0x24   :  { %s1049_s14 = smov [#allocation7]   ;;  %s949_s18 = scalar_lea.hbm %s1211_s5, 2048 }
  0x25   :  { %s54_s15 = sshll.u32 %s1049_s14, 4  ;;  %p950_p2 = scmp.ne.s32.totalorder %s1211_s5, %s949_s18  ;;  %s55_s15 = int_to_ptr.vmem [resolvable:$true] %s54_s15 }
  0x26   :  { %p953_p3 = scmp.lt.u32.totalorder %s949_s18, %s1211_s5 }
  0x28   :  { %p955_p4 = pnand %p953_p3, %p950_p2 }
  0x2a   :  { %958 = shalt.err (!%p955_p4)
}
  0x2b   :  { %s959_s25 = scalar_lea.vmem %s55_s15, 2048  ;;  %p964_p6 = scmp.lt.s32.totalorder %s55_s15, %s55_s15 }
  0x2c   :  { %p960_p5 = scmp.ne.s32.totalorder %s55_s15, %s959_s25  ;;  %p965_p7 = scmp.lt.s32.totalorder %s959_s25, %s959_s25 }
  0x2e   :  { %p966_p8 = por %p965_p7, %p964_p6 }
  0x30   :  { %p967_p9 = pnand %p966_p8, %p960_p5 }
  0x32   :  { %970 = shalt.err (!%p967_p9)
}
  0x33   :  { %s1050_s1 = smov 128   ;;  %s1051_s12 = smov 8  }
  0x34   :  { %60 = dma.hbm_to_vmem [thread:$0]  %s1211_s5, 2048, %s55_s15, [#allocation6], %s1050_s1, %s1050_s1, %s1051_s12  }
  0x35   :  { %1037 = dma.done.wait [#allocation3], 8192  }
  0x36   :  { %1038 = vsyncadd [#allocation3], 4294959104 }
  0x37   :  { %1039 = dma.done.wait [#allocation6], 10240  }
  0x38   :  { %1040 = vsyncadd [#allocation6], 4294957056  ;;  %v1052_v0 = vmov 0   ;;  %v1053_v1 = vmov 0.0   ;;  %v72_v2 = vld [vmem:[%s1206_s0] sm:$0xff]  ;;  %v147_v3 = vld [vmem:[#allocation5 + $0x8] sm:$0xff] }
  0x39   :  { %888 = vset.pattern.permute.xlu0 %v1052_v0  ;;  %274 = vmatprep.mubr.f32.mxu0 %v1053_v1  ;;  %v151_v4 = vld [vmem:[#allocation5 + $0x28] sm:$0xff]  ;;  %v149_v6 = vld [vmem:[#allocation5 + $0x18] sm:$0xff]  ;;  %v146_v8 = vld [vmem:[#allocation5] sm:$0xff]  ;;  %vm1056_vm1 = vmmov 0   ;;  %s1057_s29 = smov [#allocation9]  }
  0x3a   :  { %345 = vmatprep.mubr.f32.mxu1 %v1053_v1  ;;  %76 = vperm.xlu0 %888, %v72_v2   ;;  %v717_v5 = vpack.c.bf16 %v151_v4, %v147_v3  ;;  %v153_v7 = vld [vmem:[#allocation5 + $0x38] sm:$0xff]  ;;  %v150_v10 = vld [vmem:[#allocation5 + $0x20] sm:$0xff]  ;;  %v148_v11 = vld [vmem:[#allocation5 + $0x10] sm:$0xff]  ;;  %s631_s30 = sshll.u32 %s1057_s29, 4  ;;  %s632_s30 = int_to_ptr.vmem [resolvable:$true] %s631_s30 }
  0x3b   :  { %v749_v9 = vpack.c.bf16 %v153_v7, %v149_v6  ;;  %v152_v12 = vld [vmem:[#allocation5 + $0x30] sm:$0xff]  ;;  %v719_v13 = vpack.c.bf16 %v150_v10, %v146_v8  ;;  %v155_v15 = vld [vmem:[#allocation5 + $0x48] sm:$0xff]  ;;  %v157_v17 = vld [vmem:[#allocation5 + $0x58] sm:$0xff]  ;;  %s971_s11 = scalar_lea.vmem %s632_s30, 128  ;;  %p976_p11 = scmp.lt.s32.totalorder %s632_s30, %s632_s30 }
  0x3c   :  { %718 = vmatprep.subr.bf16.mxu0 %v717_v5  ;;  %v751_v14 = vpack.c.bf16 %v152_v12, %v148_v11  ;;  %v159_v16 = vld [vmem:[#allocation5 + $0x68] sm:$0xff]  ;;  %v161_v19 = vld [vmem:[#allocation5 + $0x78] sm:$0xff]  ;;  %v154_v20 = vld [vmem:[#allocation5 + $0x40] sm:$0xff]  ;;  %p972_p10 = scmp.ne.s32.totalorder %s632_s30, %s971_s11  ;;  %p977_p12 = scmp.lt.s32.totalorder %s971_s11, %s971_s11 }
  0x3d   :  { %750 = vmatprep.subr.bf16.mxu1 %v749_v9  ;;  %v721_v18 = vpack.c.bf16 %v159_v16, %v155_v15  ;;  %v158_v21 = vld [vmem:[#allocation5 + $0x60] sm:$0xff]  ;;  %720 = vmatpush1.bf16.msra.mxu0 %v719_v13  ;;  %v753_v22 = vpack.c.bf16 %v161_v19, %v157_v17  ;;  %v156_v24 = vld [vmem:[#allocation5 + $0x50] sm:$0xff]  ;;  %v163_v26 = vld [vmem:[#allocation5 + $0x88] sm:$0xff] }
  0x3e   :  { %752 = vmatpush1.bf16.msra.mxu1 %v751_v14  ;;  %v723_v23 = vpack.c.bf16 %v158_v21, %v154_v20  ;;  %v160_v25 = vld [vmem:[#allocation5 + $0x70] sm:$0xff]  ;;  %v167_v28 = vld [vmem:[#allocation5 + $0xa8] sm:$0xff]  ;;  %v165_v29 = vld [vmem:[#allocation5 + $0x98] sm:$0xff]  ;;  %p978_p13 = por %p977_p12, %p976_p11 }
  0x3f   :  { %722 = vmatprep.subr.bf16.mxu0 %v721_v18  ;;  %v755_v27 = vpack.c.bf16 %v160_v25, %v156_v24  ;;  %v169_v30 = vld [vmem:[#allocation5 + $0xb8] sm:$0xff]  ;;  %754 = vmatprep.subr.bf16.mxu1 %v753_v22  ;;  %v725_v31 = vpack.c.bf16 %v167_v28, %v163_v26  ;;  %v162_v33 = vld [vmem:[#allocation5 + $0x80] sm:$0xff]  ;;  %v164_v35 = vld [vmem:[#allocation5 + $0x90] sm:$0xff] }
  0x40   :  { %v757_v32 = vpack.c.bf16 %v169_v30, %v165_v29  ;;  %v166_v34 = vld [vmem:[#allocation5 + $0xa0] sm:$0xff]  ;;  %v168_v36 = vld [vmem:[#allocation5 + $0xb0] sm:$0xff]  ;;  %v171_v37 = vld [vmem:[#allocation5 + $0xc8] sm:$0xff]  ;;  %p979_p0 = pnand %p978_p13, %p972_p10 }
  0x41   :  { %v175_v38 = vld [vmem:[#allocation5 + $0xe8] sm:$0xff]  ;;  %724 = vmatpush1.bf16.msra.mxu0 %v723_v23  ;;  %v727_v39 = vpack.c.bf16 %v166_v34, %v162_v33  ;;  %v759_v40 = vpack.c.bf16 %v168_v36, %v164_v35  ;;  %v173_v41 = vld [vmem:[#allocation5 + $0xd8] sm:$0xff]  ;;  %v170_v43 = vld [vmem:[#allocation5 + $0xc0] sm:$0xff] }
  0x42   :  { %756 = vmatpush1.bf16.msra.mxu1 %v755_v27  ;;  %v177_v42 = vld [vmem:[#allocation5 + $0xf8] sm:$0xff]  ;;  %726 = vmatprep.subr.bf16.mxu0 %v725_v31  ;;  %v729_v44 = vpack.c.bf16 %v175_v38, %v171_v37  ;;  %v174_v46 = vld [vmem:[#allocation5 + $0xe0] sm:$0xff]  ;;  %v172_v47 = vld [vmem:[#allocation5 + $0xd0] sm:$0xff] }
  0x43   :  { %758 = vmatprep.subr.bf16.mxu1 %v757_v32  ;;  %v761_v45 = vpack.c.bf16 %v177_v42, %v173_v41  ;;  %v176_v48 = vld [vmem:[#allocation5 + $0xf0] sm:$0xff]  ;;  %v179_v49 = vld [vmem:[#allocation5 + $0x108] sm:$0xff]  ;;  %v181_v51 = vld [vmem:[#allocation5 + $0x118] sm:$0xff]  ;;  %v731_v53 = vpack.c.bf16 %v174_v46, %v170_v43 }
  0x44   :  { %v183_v50 = vld [vmem:[#allocation5 + $0x128] sm:$0xff]  ;;  %v185_v52 = vld [vmem:[#allocation5 + $0x138] sm:$0xff]  ;;  %v763_v54 = vpack.c.bf16 %v176_v48, %v172_v47  ;;  %v178_v55 = vld [vmem:[#allocation5 + $0x100] sm:$0xff] }
  0x45   :  { %728 = vmatpush1.bf16.msra.mxu0 %v727_v39  ;;  %v182_v56 = vld [vmem:[#allocation5 + $0x120] sm:$0xff]  ;;  %v733_v57 = vpack.c.bf16 %v183_v50, %v179_v49  ;;  %v765_v58 = vpack.c.bf16 %v185_v52, %v181_v51  ;;  %v180_v59 = vld [vmem:[#allocation5 + $0x110] sm:$0xff]  ;;  %v187_v61 = vld [vmem:[#allocation5 + $0x148] sm:$0xff] }
  0x46   :  { %760 = vmatpush1.bf16.msra.mxu1 %v759_v40  ;;  %730 = vmatprep.subr.bf16.mxu0 %v729_v44  ;;  %v184_v60 = vld [vmem:[#allocation5 + $0x130] sm:$0xff]  ;;  %v191_v62 = vld [vmem:[#allocation5 + $0x168] sm:$0xff]  ;;  %v189_v63 = vld [vmem:[#allocation5 + $0x158] sm:$0xff]  ;;  %v735_v2 = vpack.c.bf16 %v182_v56, %v178_v55 }
  0x47   :  { %762 = vmatprep.subr.bf16.mxu1 %v761_v45  ;;  %v193_v0 = vld [vmem:[#allocation5 + $0x178] sm:$0xff]  ;;  %v767_v3 = vpack.c.bf16 %v184_v60, %v180_v59  ;;  %v186_v4 = vld [vmem:[#allocation5 + $0x140] sm:$0xff]  ;;  %v737_v6 = vpack.c.bf16 %v191_v62, %v187_v61  ;;  %v188_v8 = vld [vmem:[#allocation5 + $0x150] sm:$0xff] }
  0x48   :  { %v190_v5 = vld [vmem:[#allocation5 + $0x160] sm:$0xff]  ;;  %v769_v7 = vpack.c.bf16 %v193_v0, %v189_v63  ;;  %v192_v9 = vld [vmem:[#allocation5 + $0x170] sm:$0xff]  ;;  %v195_v10 = vld [vmem:[#allocation5 + $0x188] sm:$0xff] }
  0x49   :  { %732 = vmatpush1.bf16.msra.mxu0 %v731_v53  ;;  %v199_v11 = vld [vmem:[#allocation5 + $0x1a8] sm:$0xff]  ;;  %v197_v12 = vld [vmem:[#allocation5 + $0x198] sm:$0xff]  ;;  %v739_v14 = vpack.c.bf16 %v190_v5, %v186_v4  ;;  %v771_v15 = vpack.c.bf16 %v192_v9, %v188_v8  ;;  %v194_v16 = vld [vmem:[#allocation5 + $0x180] sm:$0xff] }
  0x4a   :  { %764 = vmatpush1.bf16.msra.mxu1 %v763_v54  ;;  %734 = vmatprep.subr.bf16.mxu0 %v733_v57  ;;  %v201_v13 = vld [vmem:[#allocation5 + $0x1b8] sm:$0xff]  ;;  %v198_v17 = vld [vmem:[#allocation5 + $0x1a0] sm:$0xff]  ;;  %v741_v18 = vpack.c.bf16 %v199_v11, %v195_v10  ;;  %v196_v20 = vld [vmem:[#allocation5 + $0x190] sm:$0xff] }
  0x4b   :  { %766 = vmatprep.subr.bf16.mxu1 %v765_v58  ;;  %v773_v19 = vpack.c.bf16 %v201_v13, %v197_v12  ;;  %v200_v21 = vld [vmem:[#allocation5 + $0x1b0] sm:$0xff]  ;;  %v203_v22 = vld [vmem:[#allocation5 + $0x1c8] sm:$0xff]  ;;  %v205_v24 = vld [vmem:[#allocation5 + $0x1d8] sm:$0xff]  ;;  %v743_v26 = vpack.c.bf16 %v198_v17, %v194_v16 }
  0x4c   :  { %v207_v23 = vld [vmem:[#allocation5 + $0x1e8] sm:$0xff]  ;;  %v209_v25 = vld [vmem:[#allocation5 + $0x1f8] sm:$0xff]  ;;  %v775_v27 = vpack.c.bf16 %v200_v21, %v196_v20  ;;  %v202_v28 = vld [vmem:[#allocation5 + $0x1c0] sm:$0xff] }
  0x4d   :  { %736 = vmatpush1.bf16.msra.mxu0 %v735_v2  ;;  %v206_v29 = vld [vmem:[#allocation5 + $0x1e0] sm:$0xff]  ;;  %v745_v30 = vpack.c.bf16 %v207_v23, %v203_v22  ;;  %v777_v31 = vpack.c.bf16 %v209_v25, %v205_v24  ;;  %v204_v32 = vld [vmem:[#allocation5 + $0x1d0] sm:$0xff]  ;;  %v82_v34 = vld [vmem:[#allocation2 + $0x8] sm:$0xff] }
  0x4e   :  { %768 = vmatpush1.bf16.msra.mxu1 %v767_v3  ;;  %738 = vmatprep.subr.bf16.mxu0 %v737_v6  ;;  %v208_v33 = vld [vmem:[#allocation5 + $0x1f0] sm:$0xff]  ;;  %v86_v35 = vld [vmem:[#allocation2 + $0x28] sm:$0xff]  ;;  %v84_v36 = vld [vmem:[#allocation2 + $0x18] sm:$0xff]  ;;  %v747_v38 = vpack.c.bf16 %v206_v29, %v202_v28 }
  0x4f   :  { %770 = vmatprep.subr.bf16.mxu1 %v769_v7  ;;  %v88_v37 = vld [vmem:[#allocation2 + $0x38] sm:$0xff]  ;;  %v779_v39 = vpack.c.bf16 %v208_v33, %v204_v32  ;;  %v81_v40 = vld [vmem:[#allocation2] sm:$0xff]  ;;  %v781_v42 = vpack.c.bf16 %v86_v35, %v82_v34  ;;  %v83_v44 = vld [vmem:[#allocation2 + $0x10] sm:$0xff] }
  0x50   :  { %v85_v41 = vld [vmem:[#allocation2 + $0x20] sm:$0xff]  ;;  %v813_v43 = vpack.c.bf16 %v88_v37, %v84_v36  ;;  %v87_v45 = vld [vmem:[#allocation2 + $0x30] sm:$0xff]  ;;  %v90_v46 = vld [vmem:[#allocation2 + $0x48] sm:$0xff] }
  0x51   :  { %740 = vmatpush1.bf16.msra.mxu0 %v739_v14  ;;  %v94_v47 = vld [vmem:[#allocation2 + $0x68] sm:$0xff]  ;;  %v92_v48 = vld [vmem:[#allocation2 + $0x58] sm:$0xff]  ;;  %v145_v50 = vld [vmem:[%s1209_s3] sm:$0xff]  ;;  %v783_v51 = vpack.c.bf16 %v85_v41, %v81_v40  ;;  %v815_v52 = vpack.c.bf16 %v87_v45, %v83_v44 }
  0x52   :  { %772 = vmatpush1.bf16.msra.mxu1 %v771_v15  ;;  %742 = vmatprep.subr.bf16.mxu0 %v741_v18  ;;  %v96_v49 = vld [vmem:[#allocation2 + $0x78] sm:$0xff]  ;;  %v89_v53 = vld [vmem:[#allocation2 + $0x40] sm:$0xff]  ;;  %v785_v55 = vpack.c.bf16 %v94_v47, %v90_v46  ;;  %v91_v57 = vld [vmem:[#allocation2 + $0x50] sm:$0xff] }
  0x53   :  { %774 = vmatprep.subr.bf16.mxu1 %v773_v19  ;;  %v93_v54 = vld [vmem:[#allocation2 + $0x60] sm:$0xff]  ;;  %v817_v56 = vpack.c.bf16 %v96_v49, %v92_v48  ;;  %v95_v58 = vld [vmem:[#allocation2 + $0x70] sm:$0xff]  ;;  %v98_v59 = vld [vmem:[#allocation2 + $0x88] sm:$0xff] }
  0x54   :  { %v102_v60 = vld [vmem:[#allocation2 + $0xa8] sm:$0xff]  ;;  %v100_v61 = vld [vmem:[#allocation2 + $0x98] sm:$0xff]  ;;  %v787_v63 = vpack.c.bf16 %v93_v54, %v89_v53  ;;  %v819_v0 = vpack.c.bf16 %v95_v58, %v91_v57  ;;  %v97_v2 = vld [vmem:[#allocation2 + $0x80] sm:$0xff] }
  0x55   :  { %744 = vmatpush1.bf16.msra.mxu0 %v743_v26  ;;  %v104_v62 = vld [vmem:[#allocation2 + $0xb8] sm:$0xff]  ;;  %v101_v3 = vld [vmem:[#allocation2 + $0xa0] sm:$0xff]  ;;  %v789_v4 = vpack.c.bf16 %v102_v60, %v98_v59  ;;  %v99_v6 = vld [vmem:[#allocation2 + $0x90] sm:$0xff] }
  0x56   :  { %776 = vmatpush1.bf16.msra.mxu1 %v775_v27  ;;  %746 = vmatprep.subr.bf16.mxu0 %v745_v30  ;;  %v821_v5 = vpack.c.bf16 %v104_v62, %v100_v61  ;;  %v103_v7 = vld [vmem:[#allocation2 + $0xb0] sm:$0xff]  ;;  %v106_v8 = vld [vmem:[#allocation2 + $0xc8] sm:$0xff]  ;;  %v108_v10 = vld [vmem:[#allocation2 + $0xd8] sm:$0xff]  ;;  %v791_v12 = vpack.c.bf16 %v101_v3, %v97_v2 }
  0x57   :  { %778 = vmatprep.subr.bf16.mxu1 %v777_v31  ;;  %v110_v9 = vld [vmem:[#allocation2 + $0xe8] sm:$0xff]  ;;  %v112_v11 = vld [vmem:[#allocation2 + $0xf8] sm:$0xff]  ;;  %v823_v13 = vpack.c.bf16 %v103_v7, %v99_v6  ;;  %v105_v14 = vld [vmem:[#allocation2 + $0xc0] sm:$0xff]  ;;  %v73_v7 = vlaneseq }
  0x58   :  { %v109_v15 = vld [vmem:[#allocation2 + $0xe0] sm:$0xff]  ;;  %v793_v16 = vpack.c.bf16 %v110_v9, %v106_v8  ;;  %v825_v17 = vpack.c.bf16 %v112_v11, %v108_v10  ;;  %v107_v18 = vld [vmem:[#allocation2 + $0xd0] sm:$0xff]  ;;  %v114_v20 = vld [vmem:[#allocation2 + $0x108] sm:$0xff]  ;;  %v1054_v10 = vmov 1.0  }
  0x59   :  { %748 = vmatpush1.bf16.msra.mxu0 %v747_v38  ;;  %v111_v19 = vld [vmem:[#allocation2 + $0xf0] sm:$0xff]  ;;  %v118_v21 = vld [vmem:[#allocation2 + $0x128] sm:$0xff]  ;;  %v116_v22 = vld [vmem:[#allocation2 + $0x118] sm:$0xff]  ;;  %v795_v24 = vpack.c.bf16 %v109_v15, %v105_v14  ;;  %v74_v8 = vand.u32 127, %v73_v7  ;;  %v1055_v14 = vmov 0.0|0.0  }
  0x5a   :  { %780 = vmatpush1.bf16.msra.mxu1 %v779_v39  ;;  %782 = vmatprep.subr.bf16.mxu0 %v781_v42  ;;  %v120_v23 = vld [vmem:[#allocation2 + $0x138] sm:$0xff]  ;;  %v827_v25 = vpack.c.bf16 %v111_v19, %v107_v18  ;;  %v113_v26 = vld [vmem:[#allocation2 + $0x100] sm:$0xff]  ;;  %v797_v28 = vpack.c.bf16 %v118_v21, %v114_v20  ;;  %v115_v30 = vld [vmem:[#allocation2 + $0x110] sm:$0xff] }
  0x5b   :  { %814 = vmatprep.subr.bf16.mxu1 %v813_v43  ;;  %v117_v27 = vld [vmem:[#allocation2 + $0x120] sm:$0xff]  ;;  %v829_v29 = vpack.c.bf16 %v120_v23, %v116_v22  ;;  %v119_v31 = vld [vmem:[#allocation2 + $0x130] sm:$0xff]  ;;  %v122_v32 = vld [vmem:[#allocation2 + $0x148] sm:$0xff] }
  0x5c   :  { %275 = vmatmul.mubr.f32.vlgmr.msra.gmra.mrb[0].mxu0 %v145_v50  ;;  %v126_v33 = vld [vmem:[#allocation2 + $0x168] sm:$0xff]  ;;  %v124_v34 = vld [vmem:[#allocation2 + $0x158] sm:$0xff]  ;;  %v799_v36 = vpack.c.bf16 %v117_v27, %v113_v26  ;;  %v831_v37 = vpack.c.bf16 %v119_v31, %v115_v30  ;;  %v121_v38 = vld [vmem:[#allocation2 + $0x140] sm:$0xff] }
  0x5d   :  { %346 = vmatmul.mubr.f32.vlgmr.msra.gmra.mrb[0].mxu1 %v145_v50  ;;  %784 = vmatpush1.bf16.msra.mxu0 %v783_v51  ;;  %v128_v35 = vld [vmem:[#allocation2 + $0x178] sm:$0xff]  ;;  %v125_v39 = vld [vmem:[#allocation2 + $0x160] sm:$0xff]  ;;  %v801_v40 = vpack.c.bf16 %v126_v33, %v122_v32  ;;  %v123_v42 = vld [vmem:[#allocation2 + $0x150] sm:$0xff] }
  0x5e   :  { %816 = vmatpush1.bf16.msra.mxu1 %v815_v52  ;;  %786 = vmatprep.subr.bf16.mxu0 %v785_v55  ;;  %v833_v41 = vpack.c.bf16 %v128_v35, %v124_v34  ;;  %v127_v43 = vld [vmem:[#allocation2 + $0x170] sm:$0xff]  ;;  %v130_v44 = vld [vmem:[#allocation2 + $0x188] sm:$0xff]  ;;  %v132_v46 = vld [vmem:[#allocation2 + $0x198] sm:$0xff]  ;;  %v803_v48 = vpack.c.bf16 %v125_v39, %v121_v38 }
  0x5f   :  { %818 = vmatprep.subr.bf16.mxu1 %v817_v56  ;;  %416 = vmatprep.mubr.f32.mxu0 %v1053_v1  ;;  %v134_v45 = vld [vmem:[#allocation2 + $0x1a8] sm:$0xff]  ;;  %v136_v47 = vld [vmem:[#allocation2 + $0x1b8] sm:$0xff]  ;;  %v835_v49 = vpack.c.bf16 %v127_v43, %v123_v42  ;;  %v129_v50 = vld [vmem:[#allocation2 + $0x180] sm:$0xff] }
  0x60   :  { %487 = vmatprep.mubr.f32.mxu1 %v1053_v1  ;;  %v133_v51 = vld [vmem:[#allocation2 + $0x1a0] sm:$0xff]  ;;  %v805_v52 = vpack.c.bf16 %v134_v45, %v130_v44  ;;  %v837_v53 = vpack.c.bf16 %v136_v47, %v132_v46  ;;  %v131_v54 = vld [vmem:[#allocation2 + $0x190] sm:$0xff]  ;;  %v138_v56 = vld [vmem:[#allocation2 + $0x1c8] sm:$0xff] }
  0x61   :  { %788 = vmatpush1.bf16.msra.mxu0 %v787_v63  ;;  %v135_v55 = vld [vmem:[#allocation2 + $0x1b0] sm:$0xff]  ;;  %v142_v57 = vld [vmem:[#allocation2 + $0x1e8] sm:$0xff]  ;;  %v140_v58 = vld [vmem:[#allocation2 + $0x1d8] sm:$0xff]  ;;  %v807_v60 = vpack.c.bf16 %v133_v51, %v129_v50 }
  0x62   :  { %820 = vmatpush1.bf16.msra.mxu1 %v819_v0  ;;  %790 = vmatprep.subr.bf16.mxu0 %v789_v4  ;;  %v144_v59 = vld [vmem:[#allocation2 + $0x1f8] sm:$0xff]  ;;  %v839_v61 = vpack.c.bf16 %v135_v55, %v131_v54  ;;  %v137_v62 = vld [vmem:[#allocation2 + $0x1c0] sm:$0xff]  ;;  %v809_v63 = vpack.c.bf16 %v142_v57, %v138_v56  ;;  %v139_v3 = vld [vmem:[#allocation2 + $0x1d0] sm:$0xff] }
  0x63   :  { %822 = vmatprep.subr.bf16.mxu1 %v821_v5  ;;  %v841_v0 = vpack.c.bf16 %v144_v59, %v140_v58  ;;  %v141_v2 = vld [vmem:[#allocation2 + $0x1e0] sm:$0xff]  ;;  %v143_v4 = vld [vmem:[#allocation2 + $0x1f0] sm:$0xff]  ;;  %v526_v19 = vld [vmem:[#allocation7 + $0x28] sm:$0xff] }
  0x64   :  { %v811_v5 = vpack.c.bf16 %v141_v2, %v137_v62  ;;  %v843_v6 = vpack.c.bf16 %v143_v4, %v139_v3  ;;  %v521_v11 = vld [vmem:[#allocation7] sm:$0xff]  ;;  %v523_v15 = vld [vmem:[#allocation7 + $0x10] sm:$0xff]  ;;  %v528_v22 = vld [vmem:[#allocation7 + $0x38] sm:$0xff] }
  0x65   :  { %792 = vmatpush1.bf16.msra.mxu0 %v791_v12  ;;  %v522_v12 = vld [vmem:[#allocation7 + $0x8] sm:$0xff]  ;;  %v525_v18 = vld [vmem:[#allocation7 + $0x20] sm:$0xff]  ;;  %v527_v21 = vld [vmem:[#allocation7 + $0x30] sm:$0xff] }
  0x66   :  { %824 = vmatpush1.bf16.msra.mxu1 %v823_v13  ;;  %794 = vmatprep.subr.bf16.mxu0 %v793_v16  ;;  %v846_v13 = vpack.c.bf16 %v522_v12, %v521_v11  ;;  %v524_v16 = vld [vmem:[#allocation7 + $0x18] sm:$0xff]  ;;  %v852_v20 = vpack.c.bf16 %v526_v19, %v525_v18  ;;  %v855_v23 = vpack.c.bf16 %v528_v22, %v527_v21  ;;  %v531_v27 = vld [vmem:[#allocation7 + $0x50] sm:$0xff]  ;;  %v534_v31 = vld [vmem:[#allocation7 + $0x68] sm:$0xff] }
  0x67   :  { %826 = vmatprep.subr.bf16.mxu1 %v825_v17  ;;  %v849_v17 = vpack.c.bf16 %v524_v16, %v523_v15  ;;  %v535_v33 = vld [vmem:[#allocation7 + $0x70] sm:$0xff]  ;;  %v536_v34 = vld [vmem:[#allocation7 + $0x78] sm:$0xff] }
  0x68   :  { %v867_v35 = vpack.c.bf16 %v536_v34, %v535_v33 }
  0x69   :  { %796 = vmatpush1.bf16.msra.mxu0 %v795_v24  ;;  %v529_v24 = vld [vmem:[#allocation7 + $0x40] sm:$0xff] }
  0x6a   :  { %828 = vmatpush1.bf16.msra.mxu1 %v827_v25  ;;  %798 = vmatprep.subr.bf16.mxu0 %v797_v28  ;;  %v530_v25 = vld [vmem:[#allocation7 + $0x48] sm:$0xff]  ;;  %v532_v28 = vld [vmem:[#allocation7 + $0x58] sm:$0xff] }
  0x6b   :  { %830 = vmatprep.subr.bf16.mxu1 %v829_v29  ;;  %v858_v26 = vpack.c.bf16 %v530_v25, %v529_v24  ;;  %v533_v29 = vld [vmem:[#allocation7 + $0x60] sm:$0xff]  ;;  %v861_v30 = vpack.c.bf16 %v532_v28, %v531_v27 }
  0x6c   :  { %v864_v32 = vpack.c.bf16 %v534_v31, %v533_v29 }
  0x6d   :  { %800 = vmatpush1.bf16.msra.mxu0 %v799_v36 }
  0x6e   :  { %832 = vmatpush1.bf16.msra.mxu1 %v831_v37  ;;  %802 = vmatprep.subr.bf16.mxu0 %v801_v40 }
  0x6f   :  { %834 = vmatprep.subr.bf16.mxu1 %v833_v41 }
  0x71   :  { %804 = vmatpush1.bf16.msra.mxu0 %v803_v48  ;;  %v513_v48 = vld [vmem:[%s1210_s4] sm:$0xff] }
  0x72   :  { %836 = vmatpush1.bf16.msra.mxu1 %v835_v49  ;;  %806 = vmatprep.subr.bf16.mxu0 %v805_v52 }
  0x73   :  { %838 = vmatprep.subr.bf16.mxu1 %v837_v53 }
  0x75   :  { %808 = vmatpush1.bf16.msra.mxu0 %v807_v60 }
  0x76   :  { %840 = vmatpush1.bf16.msra.mxu1 %v839_v61  ;;  %810 = vmatprep.subr.bf16.mxu0 %v809_v63 }
  0x77   :  { %842 = vmatprep.subr.bf16.mxu1 %v841_v0 }
  0x79   :  { %812 = vmatpush1.bf16.msra.mxu0 %v811_v5 }
  0x7a   :  { %844 = vmatpush1.bf16.msra.mxu1 %v843_v6  ;;  %845 = vmatprep.subr.bf16.mxu0 %v1055_v14 }
  0xb9   :  { %v77_v9 = vpop.permute.xlu0 %76 }
  0xba   :  { %vm78_vm0 = vcmp.eq.s32.totalorder %v74_v8, %v77_v9 }
  0xbb   :  { %659 = vmatmul.mubr.msk.f32.vlgmr.msra.gmra.mrb[0].mxu0 %vm78_vm0, %v1054_v10  ;;  %660 = vmatmul.mubr.msk.f32.vlgmr.msra.gmra.mrb[0].mxu1 %vm78_vm0, %v1054_v10 }
  0xbc   :  { %847 = vmatpush3.bf16.msra.mxu0 %v846_v13  ;;  %714 = vmatprep.mubr.msk.f32.mxu0 %vm1056_vm1, %v1053_v1 }
  0xbd   :  { %848 = vmatprep.subr.bf16.mxu0 %v1055_v14 }
  0xc0   :  { %850 = vmatpush3.bf16.msra.mxu0 %v849_v17 }
  0xc1   :  { %851 = vmatprep.subr.bf16.mxu0 %v1055_v14 }
  0xc4   :  { %853 = vmatpush3.bf16.msra.mxu0 %v852_v20 }
  0xc5   :  { %854 = vmatprep.subr.bf16.mxu0 %v1055_v14 }
  0xc8   :  { %856 = vmatpush3.bf16.msra.mxu0 %v855_v23 }
  0xc9   :  { %857 = vmatprep.subr.bf16.mxu0 %v1055_v14 }
  0xcc   :  { %859 = vmatpush3.bf16.msra.mxu0 %v858_v26 }
  0xcd   :  { %860 = vmatprep.subr.bf16.mxu0 %v1055_v14 }
  0xd0   :  { %862 = vmatpush3.bf16.msra.mxu0 %v861_v30 }
  0xd1   :  { %863 = vmatprep.subr.bf16.mxu0 %v1055_v14 }
  0xd4   :  { %865 = vmatpush3.bf16.msra.mxu0 %v864_v32 }
  0xd5   :  { %866 = vmatprep.subr.bf16.mxu0 %v1055_v14 }
  0xd8   :  { %868 = vmatpush3.bf16.msra.mxu0 %v867_v35 }
 0x18e   :  { %v418_v36 = vpop.f32.mrb[0].mxu0  ;;  %v489_v37 = vpop.f32.mrb[0].mxu1 }
 0x18f   :  { %v661_v38 = vmul.f32 -1.442695, %v418_v36  ;;  %v420_v39 = vpop.f32.mrb[1].mxu0  ;;  %v491_v40 = vpop.f32.mrb[1].mxu1 }
 0x190   :  { %v662_v41 = vmul.f32 -1.442695, %v420_v39  ;;  %v663_v42 = vmul.f32 -1.442695, %v491_v40 }
 0x191   :  { %889 = vpow2.f32 %v661_v38 }
 0x192   :  { %891 = vpow2.f32 %v662_v41 }
 0x193   :  { %893 = vpow2.f32 %v663_v42 }
 0x194   :  { %895 = vtanh.f32 %v489_v37 }
 0x19b   :  { %v890_v43 = vpop.eup %889 }
 0x19c   :  { %v892_v1 = vpop.eup %891  ;;  %v497_v44 = vadd.f32 1.0, %v890_v43 }
 0x19d   :  { %v503_v45 = vadd.f32 1.0, %v892_v1  ;;  %v894_v46 = vpop.eup %893 }
 0x19e   :  { %897 = vrcp.f32 %v497_v44  ;;  %v896_v47 = vpop.eup %895  ;;  %v510_v52 = vadd.f32 1.0, %v894_v46 }
 0x19f   :  { %899 = vrcp.f32 %v503_v45 }
 0x1a0   :  { %901 = vrcp.f32 %v510_v52 }
 0x1a8   :  { %v898_v49 = vpop.eup %897 }
 0x1a9   :  { %v900_v50 = vpop.eup %899  ;;  %v515_v51 = vmul.f32 %v898_v49, %v896_v47 }
 0x1aa   :  { %v514_v53 = vmul.f32 %v900_v50, %v513_v48  ;;  %v902_v55 = vpop.eup %901 }
 0x1ac   :  { %v516_v54 = vadd.f32 %v515_v51, %v514_v53 }
 0x1ae   :  { %519 = vst [vmem:[#allocation11] sm:$0xff] %v516_v54  ;;  %903 = vtanh.f32 %v516_v54 }
 0x1b8   :  { %v904_v56 = vpop.eup %903 }
 0x1b9   :  { %v518_v57 = vmul.f32 %v904_v56, %v902_v55 }
 0x1bb   :  { %715 = vmatmul.mubr.f32.vlgmr.msra.gmra.mrb[2].mxu0 %v518_v57  ;;  %520 = vst [vmem:[#allocation9] sm:$0xff] %v518_v57 }
 0x1bc   :  { %982 = shalt.err (!%p979_p0)
}
 0x1bd   :  { %s983_s2 = scalar_lea.hbm %s1214_s8, 128 }
 0x1be   :  { %p984_p1 = scmp.ne.s32.totalorder %s1214_s8, %s983_s2  ;;  %p987_p2 = scmp.lt.u32.totalorder %s983_s2, %s1214_s8 }
 0x1c0   :  { %p989_p3 = pnand %p987_p2, %p984_p1 }
 0x1c2   :  { %992 = shalt.err (!%p989_p3)
}
 0x1c3   :  { %634 = dma.vmem_to_hbm [thread:$0]  %s632_s30, 128, %s1214_s8, [#allocation10]  }
 0x1c4   :  { %s1058_s19 = smov [#allocation11]  }
 0x1c5   :  { %s641_s20 = sshll.u32 %s1058_s19, 4  ;;  %s642_s20 = int_to_ptr.vmem [resolvable:$true] %s641_s20 }
 0x1c6   :  { %s993_s23 = scalar_lea.vmem %s642_s20, 128  ;;  %p998_p5 = scmp.lt.s32.totalorder %s642_s20, %s642_s20 }
 0x1c7   :  { %p994_p4 = scmp.ne.s32.totalorder %s642_s20, %s993_s23  ;;  %p999_p6 = scmp.lt.s32.totalorder %s993_s23, %s993_s23 }
 0x1c9   :  { %p1000_p7 = por %p999_p6, %p998_p5 }
 0x1cb   :  { %p1001_p8 = pnand %p1000_p7, %p994_p4 }
 0x1cd   :  { %1004 = shalt.err (!%p1001_p8)
}
 0x1ce   :  { %s1005_s1 = scalar_lea.hbm %s1215_s9, 128 }
 0x1cf   :  { %p1006_p9 = scmp.ne.s32.totalorder %s1215_s9, %s1005_s1  ;;  %p1009_p10 = scmp.lt.u32.totalorder %s1005_s1, %s1215_s9 }
 0x1d1   :  { %p1011_p11 = pnand %p1009_p10, %p1006_p9 }
 0x1d3   :  { %1014 = shalt.err (!%p1011_p11)
}
 0x1d4   :  { %644 = dma.vmem_to_hbm [thread:$0]  %s642_s20, 128, %s1215_s9, [#allocation10]   ;;  %v664_v58 = vld [vmem:[%s1212_s6] ss:$0 sm:$0xff] }
 0x1d5   :  { %s1059_s3 = smov [#allocation8]  }
 0x1d6   :  { %s621_s28 = sshll.u32 %s1059_s3, 4  ;;  %s622_s28 = int_to_ptr.vmem [resolvable:$true] %s621_s28 }
 0x1d7   :  { %s1015_s29 = scalar_lea.vmem %s622_s28, 128  ;;  %p1020_p13 = scmp.lt.s32.totalorder %s622_s28, %s622_s28 }
 0x1d8   :  { %p1016_p12 = scmp.ne.s32.totalorder %s622_s28, %s1015_s29  ;;  %p1021_p0 = scmp.lt.s32.totalorder %s1015_s29, %s1015_s29 }
 0x1da   :  { %p1022_p1 = por %p1021_p0, %p1020_p13 }
 0x1dc   :  { %p1023_p2 = pnand %p1022_p1, %p1016_p12 }
 0x28e   :  { %v610_v59 = vpop.f32.mrb[2].mxu0 }
 0x28f   :  { %v611_v60 = vadd.f32 %v664_v58, %v610_v59  ;;  %v716_v61 = vpop.f32.mrb[3].mxu0 }
 0x291   :  { %614 = vst [vmem:[#allocation8] sm:$0xff] %v611_v60 }
 0x292   :  { %1026 = shalt.err (!%p1023_p2)
}
 0x293   :  { %s1027_s11 = scalar_lea.hbm %s1213_s7, 128 }
 0x294   :  { %p1028_p3 = scmp.ne.s32.totalorder %s1213_s7, %s1027_s11  ;;  %p1031_p4 = scmp.lt.u32.totalorder %s1027_s11, %s1213_s7 }
 0x296   :  { %p1033_p5 = pnand %p1031_p4, %p1028_p3 }
 0x298   :  { %1036 = shalt.err (!%p1033_p5)
}
 0x299   :  { %624 = dma.vmem_to_hbm [thread:$0]  %s622_s28, 128, %s1213_s7, [#allocation4]  }
 0x29a   :  { %1041 = dma.done.wait [#allocation4], 128  }
 0x29b   :  { %1042 = vsyncadd [#allocation4], 4294967168 }
 0x29c   :  { %1043 = dma.done.wait [#allocation10], 256  }
 0x29d   :  { %1044 = vsyncadd [#allocation10], 4294967040 }
 0x29e   :  { %654 = vsyncpa [#allocation3], 1 }
 0x29f   :  { %655 = vsyncpa [#allocation6], 1 }
 0x2a0   :  { %656 = vsyncpa [#allocation4], 1 }
 0x2a1   :  { %657 = vsyncpa [#allocation10], 1 }

</bundles_post_ra>
